<compile_context>
chip_gen: v5e
topology: v5e:2x2
jax: 0.10.0
libtpu: 0.0.40
codegen_flags: <defaults>
</compile_context>

<pallas_src>
import functools

import jax
import jax.numpy as jnp
import numpy as np
from jax.experimental import pallas as pl
from jax.experimental.pallas import tpu as pltpu

_LANES = 128


def _dice_partial_kernel(scores_ref, labels_ref, out_ref, *,
                         hw_valid, apply_softmax, needs_mask):
    """Accumulate per-class (intersect, y_sum, z_sum) partial sums.

    scores_ref: (C, TR, 128) scores for one batch element / row tile.
    labels_ref: (TR, 128) int32 labels.
    out_ref:    (3, C, 128) f32 resident accumulator (one block per batch).
    """
    n = pl.program_id(1)

    @pl.when(n == 0)
    def _init():
        out_ref[...] = jnp.zeros_like(out_ref)

    s = scores_ref[...].astype(jnp.float32)          # (C, TR, 128)
    lab = labels_ref[...]                            # (TR, 128) int32
    TR, L = lab.shape

    if apply_softmax:
        # Fused softmax over the class dim (fully resident in the tile).
        s = jnp.exp(s - jnp.max(s, axis=0, keepdims=True))
        s = s / jnp.sum(s, axis=0, keepdims=True)

    if needs_mask:
        # Mask spatial positions beyond H*W (ragged tail of the last row tile
        # and/or the lane padding added when H*W % 128 != 0).
        row = jax.lax.broadcasted_iota(jnp.int32, (TR, L), 0) + n * TR
        lane = jax.lax.broadcasted_iota(jnp.int32, (TR, L), 1)
        valid = (row * L + lane) < hw_valid
        lab = jnp.where(valid, lab, -1)
        s = jnp.where(valid[None, :, :], s, 0.0)

    cls = jax.lax.broadcasted_iota(jnp.int32, s.shape, 0)   # (C, TR, 128)
    match = lab[None, :, :] == cls                          # fused one-hot

    # Sublane-partial reductions -> lane-dense (C, 128) accumulators.
    out_ref[0] += jnp.sum(jnp.where(match, s, 0.0), axis=1)     # intersect
    out_ref[1] += jnp.sum(jnp.where(match, 1.0, 0.0), axis=1)   # y_sum
    out_ref[2] += jnp.sum(s * s, axis=1)                        # z_sum


@functools.partial(jax.jit, static_argnames=("n_classes", "softmax", "tile_rows"))
def dice_loss_pallas(inputs, target, *, n_classes, weight=None,
                     softmax=False, tile_rows=None):
    """Forward DiceLoss. inputs: (B, C, H, W) float, target: (B, H, W) int."""
    B, C, H, W = inputs.shape
    assert C == n_classes, "predict & target class dims must match"
    HW = H * W
    hw_pad = pl.cdiv(HW, _LANES) * _LANES

    scores = inputs.reshape(B, C, HW)                  # free view of NCHW
    labels = target.reshape(B, HW).astype(jnp.int32)   # free view
    if hw_pad != HW:
        # Only when H*W is not a multiple of 128; the kernel masks these lanes
        # anyway, pad values are belt-and-suspenders.
        scores = jnp.pad(scores, ((0, 0), (0, 0), (0, hw_pad - HW)))
        labels = jnp.pad(labels, ((0, 0), (0, hw_pad - HW)), constant_values=-1)

    rows = hw_pad // _LANES
    scores = scores.reshape(B, C, rows, _LANES)
    labels = labels.reshape(B, rows, _LANES)

    if tile_rows is None:
        # ~2 MiB of scores per block: amortizes per-step overhead and fits the
        # default scoped-VMEM limit on v5e/v6e/v7x with double buffering.
        itemsize = jnp.dtype(scores.dtype).itemsize
        tr = max(8, ((2 * 1024 * 1024) // (C * _LANES * itemsize)) // 8 * 8)
        rows_pad8 = pl.cdiv(rows, 8) * 8
        tile_rows = min(tr, rows_pad8)
    assert tile_rows % 8 == 0, "tile_rows must be a multiple of 8"

    num_tiles = pl.cdiv(rows, tile_rows)
    needs_mask = (hw_pad != HW) or (rows % tile_rows != 0)

    kernel = functools.partial(_dice_partial_kernel, hw_valid=HW,
                               apply_softmax=softmax, needs_mask=needs_mask)

    partials = pl.pallas_call(
        kernel,
        out_shape=jax.ShapeDtypeStruct((B, 3, C, _LANES), jnp.float32),
        grid_spec=pltpu.PrefetchScalarGridSpec(
            num_scalar_prefetch=0,
            grid=(B, num_tiles),
            in_specs=[
                pl.BlockSpec((None, C, tile_rows, _LANES),
                             lambda b, n: (b, 0, n, 0)),
                pl.BlockSpec((None, tile_rows, _LANES),
                             lambda b, n: (b, n, 0)),
            ],
            out_specs=pl.BlockSpec((None, 3, C, _LANES),
                                   lambda b, n: (b, 0, 0, 0)),
        ),
        compiler_params=pltpu.CompilerParams(
            dimension_semantics=("parallel", "arbitrary"),
            vmem_limit_bytes=32 * 1024 * 1024),
    )(scores, labels)

    # O(C) epilogue in plain JAX: final cross-lane/batch reduce + dice math.
    sums = jnp.sum(partials, axis=(0, 3))              # (3, C)
    intersect, y_sum, z_sum = sums[0], sums[1], sums[2]
    smooth = 1e-5
    dice = 1.0 - (2.0 * intersect + smooth) / (z_sum + y_sum + smooth)   # (C,)
    if weight is None:
        weight = [1.0] * n_classes
    w = jnp.asarray(weight, jnp.float32)
    return jnp.sum(w * dice) / n_classes


def dice_loss_ref(inputs, target, *, n_classes, weight=None, softmax=False):
    """Pure-JAX reference mirroring the PyTorch module."""
    if softmax:
        inputs = jax.nn.softmax(inputs, axis=1)
    onehot = (target[:, None, :, :]
              == jnp.arange(n_classes)[None, :, None, None]).astype(jnp.float32)
    if weight is None:
        weight = [1.0] * n_classes
    smooth = 1e-5
    loss = 0.0
    for i in range(n_classes):
        s = inputs[:, i].astype(jnp.float32)
        t = onehot[:, i]
        inter = jnp.sum(s * t)
        y_sum = jnp.sum(t * t)
        z_sum = jnp.sum(s * s)
        d = 1.0 - (2.0 * inter + smooth) / (z_sum + y_sum + smooth)
        loss = loss + d * weight[i]
    return loss / n_classes


if __name__ == "__main__":
    C = 4
    key = jax.random.PRNGKey(0)
    k1, k2, k3 = jax.random.split(key, 3)

    def make(B, H, W, k):
        k_in, k_tg = jax.random.split(k)
        x = jax.random.normal(k_in, (B, C, H, W), dtype=jnp.float32)
        t = jax.random.randint(k_tg, (B, H, W), 0, C, dtype=jnp.int32)
        return x, t

    # 1) basic case (module defaults), masked tail path
    x, t = make(2, 16, 16, k1)
    got = jax.block_until_ready(dice_loss_pallas(x, t, n_classes=C))
    ref = jax.block_until_ready(dice_loss_ref(x, t, n_classes=C))
    np.testing.assert_allclose(np.asarray(got), np.asarray(ref),
                               rtol=1e-5, atol=1e-5)

    # 2) fused in-kernel softmax + per-class weights
    w = [0.5, 1.0, 1.5, 2.0]
    got = jax.block_until_ready(
        dice_loss_pallas(x, t, n_classes=C, weight=w, softmax=True))
    ref = jax.block_until_ready(
        dice_loss_ref(x, t, n_classes=C, weight=w, softmax=True))
    np.testing.assert_allclose(np.asarray(got), np.asarray(ref),
                               rtol=1e-5, atol=1e-5)

    # 3) H*W multiple of 128 -> unmasked fast path
    x, t = make(2, 32, 32, k2)
    got = jax.block_until_ready(dice_loss_pallas(x, t, n_classes=C))
    ref = jax.block_until_ready(dice_loss_ref(x, t, n_classes=C))
    np.testing.assert_allclose(np.asarray(got), np.asarray(ref),
                               rtol=1e-5, atol=1e-5)

    # 4) ragged H*W + multiple row tiles (forced small tile_rows)
    x, t = make(2, 36, 36, k3)
    got = jax.block_until_ready(dice_loss_pallas(x, t, n_classes=C, tile_rows=8))
    ref = jax.block_until_ready(dice_loss_ref(x, t, n_classes=C))
    np.testing.assert_allclose(np.asarray(got), np.asarray(ref),
                               rtol=1e-5, atol=1e-5)

    print("KERNEL_OK")
</pallas_src>

<mosaic_0001>
module attributes {stable_mosaic.version = 11 : i64} {
  func.func @_dice_partial_kernel(%arg0: i32, %arg1: i32, %arg2: memref<1x4x8x128xf32, #tpu.memory_space<vmem>>, %arg3: memref<1x8x128xi32, #tpu.memory_space<vmem>>, %arg4: memref<1x3x4x128xf32, #tpu.memory_space<vmem>>) attributes {dimension_semantics = [#tpu.dimension_semantics<parallel>, #tpu.dimension_semantics<arbitrary>], iteration_bounds = array<i64: 2, 1>, scalar_prefetch = 0 : i64, scratch_operands = 0 : i64, tpu.core_type = #tpu.core_type<tc>, window_params = [{transform_indices = @transform_0, window_bounds = array<i64: 1, 4, 8, 128>}, {transform_indices = @transform_1, window_bounds = array<i64: 1, 8, 128>}, {transform_indices = @transform_2, window_bounds = array<i64: 1, 3, 4, 128>}]} {
    %c0_i32 = arith.constant 0 : i32
    %0 = arith.cmpi eq, %arg1, %c0_i32 : i32
    %1 = arith.extui %0 : i1 to i32
    %c0_i32_0 = arith.constant 0 : i32
    %2 = arith.cmpi ne, %1, %c0_i32_0 : i32
    scf.if %2 {
      %cst_35 = arith.constant 0.000000e+00 : f32
      %55 = vector.broadcast %cst_35 : f32 to vector<3x4x128xf32>
      %c0_36 = arith.constant 0 : index
      %c0_37 = arith.constant 0 : index
      %c0_38 = arith.constant 0 : index
      %c0_39 = arith.constant 0 : index
      %56 = vector.load %arg4[%c0_36, %c0_37, %c0_38, %c0_39] : memref<1x3x4x128xf32, #tpu.memory_space<vmem>>, vector<1x3x4x128xf32>
      %57 = vector.shape_cast %56 : vector<1x3x4x128xf32> to vector<3x4x128xf32>
      %58 = vector.shape_cast %55 : vector<3x4x128xf32> to vector<1x3x4x128xf32>
      tpu.vector_store %arg4[%c0_36, %c0_37, %c0_38, %c0_39], %58 {strides = array<i32>} : memref<1x3x4x128xf32, #tpu.memory_space<vmem>>, vector<1x3x4x128xf32>,
    } else {
    }
    %c0 = arith.constant 0 : index
    %c0_1 = arith.constant 0 : index
    %c0_2 = arith.constant 0 : index
    %c0_3 = arith.constant 0 : index
    %3 = vector.load %arg2[%c0, %c0_1, %c0_2, %c0_3] : memref<1x4x8x128xf32, #tpu.memory_space<vmem>>, vector<1x4x8x128xf32>
    %4 = vector.shape_cast %3 : vector<1x4x8x128xf32> to vector<4x8x128xf32>
    %c0_4 = arith.constant 0 : index
    %c0_5 = arith.constant 0 : index
    %c0_6 = arith.constant 0 : index
    %5 = vector.load %arg3[%c0_4, %c0_5, %c0_6] : memref<1x8x128xi32, #tpu.memory_space<vmem>>, vector<1x8x128xi32>
    %6 = vector.shape_cast %5 : vector<1x8x128xi32> to vector<8x128xi32>
    %7 = tpu.iota {dimensions = array<i32: 0>} : vector<8x128xi32>
    %c8_i32 = arith.constant 8 : i32
    %8 = arith.muli %arg1, %c8_i32 : i32
    %9 = vector.broadcast %8 : i32 to vector<8x128xi32>
    %10 = arith.addi %7, %9 : vector<8x128xi32>
    %11 = tpu.iota {dimensions = array<i32: 1>} : vector<8x128xi32>
    %c128_i32 = arith.constant 128 : i32
    %12 = vector.broadcast %c128_i32 : i32 to vector<8x128xi32>
    %13 = arith.muli %10, %12 : vector<8x128xi32>
    %14 = arith.addi %13, %11 : vector<8x128xi32>
    %c256_i32 = arith.constant 256 : i32
    %15 = vector.broadcast %c256_i32 : i32 to vector<8x128xi32>
    %16 = arith.cmpi slt, %14, %15 : vector<8x128xi32>
    %c-1_i32 = arith.constant -1 : i32
    %17 = vector.broadcast %c-1_i32 : i32 to vector<8x128xi32>
    %18 = arith.select %16, %6, %17 : vector<8x128xi1>, vector<8x128xi32>
    %19 = vector.shape_cast %16 : vector<8x128xi1> to vector<1x8x128xi1>
    %cst = arith.constant 0.000000e+00 : f32
    %20 = vector.shape_cast %19 : vector<1x8x128xi1> to vector<1x8x128xi1>
    %21 = vector.broadcast %20 : vector<1x8x128xi1> to vector<4x8x128xi1>
    %22 = vector.broadcast %cst : f32 to vector<4x8x128xf32>
    %23 = arith.select %21, %4, %22 : vector<4x8x128xi1>, vector<4x8x128xf32>
    %24 = tpu.iota {dimensions = array<i32: 0>} : vector<4x8x128xi32>
    %25 = vector.shape_cast %18 : vector<8x128xi32> to vector<1x8x128xi32>
    %26 = vector.broadcast %25 : vector<1x8x128xi32> to vector<4x8x128xi32>
    %27 = arith.cmpi eq, %26, %24 : vector<4x8x128xi32>
    %c0_7 = arith.constant 0 : index
    %c0_8 = arith.constant 0 : index
    %c0_9 = arith.constant 0 : index
    %c0_10 = arith.constant 0 : index
    %28 = vector.load %arg4[%c0_7, %c0_8, %c0_9, %c0_10] : memref<1x3x4x128xf32, #tpu.memory_space<vmem>>, vector<1x1x4x128xf32>
    %29 = vector.shape_cast %28 : vector<1x1x4x128xf32> to vector<4x128xf32>
    %cst_11 = arith.constant 0.000000e+00 : f32
    %30 = vector.broadcast %cst_11 : f32 to vector<4x8x128xf32>
    %31 = arith.select %27, %23, %30 : vector<4x8x128xi1>, vector<4x8x128xf32>
    %cst_12 = arith.constant dense<0.000000e+00> : vector<4x128xf32>
    %32 = vector.multi_reduction <add>, %31, %cst_12 [1] : vector<4x8x128xf32> to vector<4x128xf32>
    %33 = arith.addf %29, %32 : vector<4x128xf32>
    %c0_13 = arith.constant 0 : index
    %c0_14 = arith.constant 0 : index
    %c0_15 = arith.constant 0 : index
    %c0_16 = arith.constant 0 : index
    %34 = vector.load %arg4[%c0_13, %c0_14, %c0_15, %c0_16] : memref<1x3x4x128xf32, #tpu.memory_space<vmem>>, vector<1x1x4x128xf32>
    %35 = vector.shape_cast %34 : vector<1x1x4x128xf32> to vector<4x128xf32>
    %36 = vector.shape_cast %33 : vector<4x128xf32> to vector<1x1x4x128xf32>
    tpu.vector_store %arg4[%c0_13, %c0_14, %c0_15, %c0_16], %36 {strides = array<i32>} : memref<1x3x4x128xf32, #tpu.memory_space<vmem>>, vector<1x1x4x128xf32>,
    %c0_17 = arith.constant 0 : index
    %c1 = arith.constant 1 : index
    %c0_18 = arith.constant 0 : index
    %c0_19 = arith.constant 0 : index
    %37 = vector.load %arg4[%c0_17, %c1, %c0_18, %c0_19] : memref<1x3x4x128xf32, #tpu.memory_space<vmem>>, vector<1x1x4x128xf32>
    %38 = vector.shape_cast %37 : vector<1x1x4x128xf32> to vector<4x128xf32>
    %cst_20 = arith.constant 1.000000e+00 : f32
    %cst_21 = arith.constant 0.000000e+00 : f32
    %39 = vector.broadcast %cst_20 : f32 to vector<4x8x128xf32>
    %40 = vector.broadcast %cst_21 : f32 to vector<4x8x128xf32>
    %41 = arith.select %27, %39, %40 : vector<4x8x128xi1>, vector<4x8x128xf32>
    %cst_22 = arith.constant dense<0.000000e+00> : vector<4x128xf32>
    %42 = vector.multi_reduction <add>, %41, %cst_22 [1] : vector<4x8x128xf32> to vector<4x128xf32>
    %43 = arith.addf %38, %42 : vector<4x128xf32>
    %c0_23 = arith.constant 0 : index
    %c1_24 = arith.constant 1 : index
    %c0_25 = arith.constant 0 : index
    %c0_26 = arith.constant 0 : index
    %44 = vector.load %arg4[%c0_23, %c1_24, %c0_25, %c0_26] : memref<1x3x4x128xf32, #tpu.memory_space<vmem>>, vector<1x1x4x128xf32>
    %45 = vector.shape_cast %44 : vector<1x1x4x128xf32> to vector<4x128xf32>
    %46 = vector.shape_cast %43 : vector<4x128xf32> to vector<1x1x4x128xf32>
    tpu.vector_store %arg4[%c0_23, %c1_24, %c0_25, %c0_26], %46 {strides = array<i32>} : memref<1x3x4x128xf32, #tpu.memory_space<vmem>>, vector<1x1x4x128xf32>,
    %c0_27 = arith.constant 0 : index
    %c2 = arith.constant 2 : index
    %c0_28 = arith.constant 0 : index
    %c0_29 = arith.constant 0 : index
    %47 = vector.load %arg4[%c0_27, %c2, %c0_28, %c0_29] : memref<1x3x4x128xf32, #tpu.memory_space<vmem>>, vector<1x1x4x128xf32>
    %48 = vector.shape_cast %47 : vector<1x1x4x128xf32> to vector<4x128xf32>
    %49 = arith.mulf %23, %23 : vector<4x8x128xf32>
    %cst_30 = arith.constant dense<0.000000e+00> : vector<4x128xf32>
    %50 = vector.multi_reduction <add>, %49, %cst_30 [1] : vector<4x8x128xf32> to vector<4x128xf32>
    %51 = arith.addf %48, %50 : vector<4x128xf32>
    %c0_31 = arith.constant 0 : index
    %c2_32 = arith.constant 2 : index
    %c0_33 = arith.constant 0 : index
    %c0_34 = arith.constant 0 : index
    %52 = vector.load %arg4[%c0_31, %c2_32, %c0_33, %c0_34] : memref<1x3x4x128xf32, #tpu.memory_space<vmem>>, vector<1x1x4x128xf32>
    %53 = vector.shape_cast %52 : vector<1x1x4x128xf32> to vector<4x128xf32>
    %54 = vector.shape_cast %51 : vector<4x128xf32> to vector<1x1x4x128xf32>
    tpu.vector_store %arg4[%c0_31, %c2_32, %c0_33, %c0_34], %54 {strides = array<i32>} : memref<1x3x4x128xf32, #tpu.memory_space<vmem>>, vector<1x1x4x128xf32>,
    return
  }
  func.func @transform_0(%arg0: i32, %arg1: i32) -> (i32, i32, i32, i32) {
    %c0_i32 = arith.constant 0 : i32
    %c0_i32_0 = arith.constant 0 : i32
    %c0_i32_1 = arith.constant 0 : i32
    return %arg0, %c0_i32, %arg1, %c0_i32_0 : i32, i32, i32, i32
  }
  func.func @transform_1(%arg0: i32, %arg1: i32) -> (i32, i32, i32) {
    %c0_i32 = arith.constant 0 : i32
    %c0_i32_0 = arith.constant 0 : i32
    return %arg0, %arg1, %c0_i32 : i32, i32, i32
  }
  func.func @transform_2(%arg0: i32, %arg1: i32) -> (i32, i32, i32, i32) {
    %c0_i32 = arith.constant 0 : i32
    %c0_i32_0 = arith.constant 0 : i32
    %c0_i32_1 = arith.constant 0 : i32
    %c0_i32_2 = arith.constant 0 : i32
    return %arg0, %c0_i32, %c0_i32_0, %c0_i32_1 : i32, i32, i32, i32
  }
}

</mosaic_0001>

<bundles_post_ra>
// kernel: dice_loss_pallas.1
= control target key start
LH: loop header
LB: loop body
LE: loop exit
PB: predicated region body
PF: predicated region fallthrough
CT: control target
= control target key end

     0   :  { %s724_s9 = smov 0   ;;  %s726_s10 = smov 0   ;;  %s835_s0 = inlined_call_operand.vmem [shape: f32[2,4,2,128], index: 0, kind: input, shape index: {}]   ;;  %s836_s1 = inlined_call_operand.vmem [shape: s32[2,2,128], index: 1, kind: input, shape index: {}]   ;;  %s837_s2 = inlined_call_operand.vmem [shape: f32[2,3,4,128], index: 2, kind: output, shape index: {}]  }
   0x1   :  { %s728_s11 = smov 0   ;;  %s730_s12 = smov 0  }
   0x2   :  { %s732_s13 = smov 0  }
   0x3 LB: > { %s24_s14 = sadd.s32 1, %s698_s12  ;;  %p40_p1 = scmp.ne.s32.totalorder %s690_s10, %s686_s9  ;;  %s702_s13 = sphi %s732_s13, %s12_s13   ;;  %s698_s12 = sphi %s730_s12, %s841_s12   ;;  %s694_s11 = sphi %s728_s11, %s840_s11   ;;  %s690_s10 = sphi %s726_s10, %s839_s10   ;;  %s686_s9 = sphi %s724_s9, %s838_s9  }
   0x4   : > { %p26_p0 = scmp.ge.s32.totalorder %s24_s14, 2  ;;  %p41_p2 = scmp.eq.s32.totalorder %s702_s13, 0 }
   0x5   : > { %s33_s16 = sadd.s32 1, %s690_s10  ;;  %p557_p5 = scmp.ge.s32.totalorder %s702_s13, 2 }
   0x6   : > { %s843_s14 = smov (%p26_p0, %s24_s14), 0  ;;  %p42_p3 = por %p41_p2, %p40_p1 }
   0x7   : > { %s28_s15 = ssub.s32 %s698_s12, %s843_s14  ;;  %120 = sbr.rel (%p557_p5) target bundleno = 26 (0x1a), region = 16 }
   0x8   : > { %p31_p4 = scmp.eq.s32.totalorder %s28_s15, 0 }
   0xa   : > { %s759_s17 = scalar_select %p31_p4, %s690_s10, %s33_s16  }
   0xc   : > { %123 = sbr.rel (!%p42_p3) target bundleno = 26 (0x1a), region = 20  ;;  %s125_s18 = sand.u32 (%p42_p3), 1, %s690_s10  }
   0xd   : > { %s573_s19 = sshll.u32 (%p42_p3), %s698_s12, 3  ;;  %s558_s20 = sshll.u32 (%p42_p3), %s125_s18, 5 }
   0xe   : > { %s135_s23 = scalar_lea.vmem (%p42_p3), %s835_s0, %s573_s19   ;;  %s127_s24 = scalar_lea.vmem (%p42_p3), [#allocation2], %s558_s20  }
   0xf   : > { %s704_s25 = smov (%p42_p3), 0  }
  0x11 LB: >> { %v154_v0 = vld [vmem:[%s135_s23] sm:$0x3]  ;;  %v156_v1 = vld [vmem:[%s135_s23 + $0x2] sm:$0x3]  ;;  %v158_v2 = vld [vmem:[%s135_s23 + $0x4] sm:$0x3]  ;;  %s706_s25 = sphi %s704_s25, %s148_s25  }
  0x12   : >> { %155 = vst [vmem:[%s127_s24] sm:$0x3] %v154_v0  ;;  %v160_v3 = vld [vmem:[%s135_s23 + $0x6] sm:$0x3]  ;;  %s148_s25 = sadd.s32 1, %s706_s25  }
  0x13   : >> { %157 = vst [vmem:[%s127_s24 + $0x8] sm:$0x3] %v156_v1  ;;  %p147_p6 = scmp.ge.s32.totalorder %s148_s25, 1 }
  0x14   : >> { %159 = vst [vmem:[%s127_s24 + $0x10] sm:$0x3] %v158_v2 }
  0x15   : >> { %161 = vst [vmem:[%s127_s24 + $0x18] sm:$0x3] %v160_v3  ;;  %150 = sbr.rel (!%p147_p6) target bundleno = 17 (0x11), region = 115 }
  0x1a PF: > { %p563_p7 = scmp.ge.s32.totalorder %s702_s13, 1  ;;  %p231_p8 = scmp.lt.s32.totalorder %s702_s13, 3 }
  0x1c   : > { %p232_p9 = pnand %p563_p7, %p231_p8 }
  0x1d   : > { %p275_p10 = scmp.lt.s32.totalorder (!%p232_p9), %s694_s11, 1  ;;  %s238_s26 = sand.u32 (!%p232_p9), 1, %s686_s9  }
  0x1e   : > { %235 = sbr.rel (%p232_p9) target bundleno = 80 (0x50), region = 65  ;;  %s564_s27 = sshll.u32 (!%p232_p9), %s238_s26, 5 }
  0x1f   : > { %s240_s5 = scalar_lea.vmem (!%p232_p9), [#allocation2], %s564_s27 }
  0x23   : > { %v302_v4 = vlaneseq  ;;  %s845_s11 = smov (!%p275_p10, %s694_s11), 1  ;;  %v297_v8 = vld [vmem:[%s240_s5] sm:$0xff]  ;;  %v298_v9 = vld [vmem:[%s240_s5 + $0x8] sm:$0xff]  ;;  %v299_v10 = vld [vmem:[%s240_s5 + $0x10] sm:$0xff]  ;;  %v708_v13 = vmov 0.0   ;;  %vm356_vm5 = vcmask 1041409  }
  0x24   : > { %s574_s28 = smul.u32 12, %s845_s11  ;;  %s565_s29 = sshll.u32 %s845_s11, 1  ;;  %v300_v14 = vld [vmem:[%s240_s5 + $0x18] sm:$0xff]  ;;  %vm358_vm6 = vcmask 1042434   ;;  %vm360_vm7 = vcmask 1043459  }
  0x25   : > { %v303_v5 = vshrl.u32 %v302_v4, 7  ;;  %v308_v6 = vand.u32 127, %v302_v4  ;;  %s281_s4 = scalar_lea.vmem %s836_s1, %s565_s29 }
  0x26   : > { %s778_s8 = scalar_lea.vmem %s837_s2, %s574_s28  ;;  %v301_v11 = vld [vmem:[%s281_s4] sm:$0xff] }
  0x27   : > { %v309_v7 = vmul.u32 128, %v303_v5  ;;  %294 = vst [vmem:[%s778_s8] sm:$0xf] %v708_v13 }
  0x28   : > { %295 = vst [vmem:[%s778_s8 + $0x4] sm:$0xf] %v708_v13 }
  0x29   : > { %v310_v12 = vadd.s32 %v309_v7, %v308_v6  ;;  %296 = vst [vmem:[%s778_s8 + $0x8] sm:$0xf] %v708_v13 }
  0x2b   : > { %vm311_vm0 = vcmp.lt.s32.totalorder %v310_v12, 256 }
  0x2c   : > { %v312_v15 = vsel %vm311_vm0, %v301_v11, 4294967295  ;;  %v783_v16 = vsel %vm311_vm0, %v297_v8, 0.0  ;;  %v785_v17 = vsel %vm311_vm0, %v298_v9, 0.0  ;;  %v787_v18 = vsel %vm311_vm0, %v299_v10, 0.0 }
  0x2d   : > { %v789_v19 = vsel %vm311_vm0, %v300_v14, 0.0  ;;  %vm319_vm1 = vcmp.eq.s32.totalorder %v312_v15, 0  ;;  %vm320_vm2 = vcmp.eq.s32.totalorder %v312_v15, 1  ;;  %vm321_vm3 = vcmp.eq.s32.totalorder %v312_v15, 2 }
  0x2e   : > { %vm322_vm4 = vcmp.eq.s32.totalorder %v312_v15, 3  ;;  %v324_v20 = vsel %vm319_vm1, %v783_v16, 0.0  ;;  %v325_v21 = vsel %vm320_vm2, %v785_v17, 0.0  ;;  %v326_v22 = vsel %vm321_vm3, %v787_v18, 0.0  ;;  %v323_v7 = vld [vmem:[%s778_s8] sm:$0xf] }
  0x2f   : > { %v327_v23 = vsel %vm322_vm4, %v789_v19, 0.0  ;;  %v328_v24 = vrot.slane %v324_v20, 4  ;;  %v334_v25 = vrot.slane %v325_v21, 4  ;;  %v340_v26 = vrot.slane %v326_v22, 4 }
  0x30   : > { %v346_v27 = vrot.slane %v327_v23, 4  ;;  %v367_v28 = vsel %vm319_vm1, 1.0, %v708_v13  ;;  %v368_v29 = vsel %vm320_vm2, 1.0, %v708_v13  ;;  %v369_v30 = vsel %vm321_vm3, 1.0, %v708_v13 }
  0x31   : > { %v329_v31 = vadd.f32 %v328_v24, %v324_v20  ;;  %v335_v32 = vadd.f32 %v334_v25, %v325_v21  ;;  %v341_v33 = vadd.f32 %v340_v26, %v326_v22  ;;  %v370_v34 = vsel %vm322_vm4, 1.0, %v708_v13 }
  0x32   : > { %v347_v35 = vadd.f32 %v346_v27, %v327_v23  ;;  %v371_v36 = vrot.slane %v367_v28, 4  ;;  %v377_v37 = vrot.slane %v368_v29, 4  ;;  %v383_v38 = vrot.slane %v369_v30, 4 }
  0x33   : > { %v330_v39 = vrot.slane %v329_v31, 2  ;;  %v336_v40 = vrot.slane %v335_v32, 2  ;;  %v342_v41 = vrot.slane %v341_v33, 2  ;;  %v389_v42 = vrot.slane %v370_v34, 4 }
  0x34   : > { %v348_v43 = vrot.slane %v347_v35, 2  ;;  %v372_v44 = vadd.f32 %v371_v36, %v367_v28  ;;  %v378_v45 = vadd.f32 %v377_v37, %v368_v29  ;;  %v384_v46 = vadd.f32 %v383_v38, %v369_v30 }
  0x35   : > { %v331_v47 = vadd.f32 %v330_v39, %v329_v31  ;;  %v337_v48 = vadd.f32 %v336_v40, %v335_v32  ;;  %v343_v49 = vadd.f32 %v342_v41, %v341_v33  ;;  %v390_v50 = vadd.f32 %v389_v42, %v370_v34 }
  0x36   : > { %v349_v51 = vadd.f32 %v348_v43, %v347_v35  ;;  %v373_v52 = vrot.slane %v372_v44, 2  ;;  %v379_v53 = vrot.slane %v378_v45, 2  ;;  %v385_v54 = vrot.slane %v384_v46, 2 }
  0x37   : > { %v332_v55 = vrot.slane %v331_v47, 1  ;;  %v338_v56 = vrot.slane %v337_v48, 1  ;;  %v344_v57 = vrot.slane %v343_v49, 1  ;;  %v391_v58 = vrot.slane %v390_v50, 2 }
  0x38   : > { %v350_v59 = vrot.slane %v349_v51, 1  ;;  %v374_v60 = vadd.f32 %v373_v52, %v372_v44  ;;  %v380_v61 = vadd.f32 %v379_v53, %v378_v45  ;;  %v386_v62 = vadd.f32 %v385_v54, %v384_v46 }
  0x39   : > { %v333_v63 = vadd.f32 %v332_v55, %v331_v47  ;;  %v339_v0 = vadd.f32 %v338_v56, %v337_v48  ;;  %v345_v1 = vadd.f32 %v344_v57, %v343_v49  ;;  %v392_v2 = vadd.f32 %v391_v58, %v390_v50  ;;  %v569_v50 = vld [vmem:[%s778_s8 + $0x8] sm:$0xf] }
  0x3a   : > { %v351_v3 = vadd.f32 %v350_v59, %v349_v51  ;;  %v375_v4 = vrot.slane %v374_v60, 1  ;;  %v381_v5 = vrot.slane %v380_v61, 1  ;;  %v387_v6 = vrot.slane %v386_v62, 1 }
  0x3b   : > { %v357_v8 = vsel %vm356_vm5, %v339_v0, %v333_v63  ;;  %v393_v9 = vrot.slane %v392_v2, 1  ;;  %v407_v10 = vmul.f32 %v783_v16, %v783_v16  ;;  %v408_v11 = vmul.f32 %v785_v17, %v785_v17  ;;  %v567_v16 = vld [vmem:[%s778_s8 + $0x4] sm:$0xf] }
  0x3c   : > { %v359_v12 = vsel %vm358_vm6, %v345_v1, %v357_v8  ;;  %v376_v13 = vadd.f32 %v375_v4, %v374_v60  ;;  %v382_v14 = vadd.f32 %v381_v5, %v380_v61  ;;  %v388_v15 = vadd.f32 %v387_v6, %v386_v62 }
  0x3d   : > { %v361_v20 = vsel %vm360_vm7, %v351_v3, %v359_v12  ;;  %v394_v21 = vadd.f32 %v393_v9, %v392_v2  ;;  %v409_v22 = vmul.f32 %v787_v18, %v787_v18  ;;  %v410_v23 = vmul.f32 %v789_v19, %v789_v19 }
  0x3e   : > { %v363_v24 = vadd.f32 %v361_v20, %v323_v7  ;;  %v399_v17 = vsel %vm356_vm5, %v382_v14, %v376_v13  ;;  %v411_v25 = vrot.slane %v407_v10, 4  ;;  %v417_v26 = vrot.slane %v408_v11, 4 }
  0x3f   : > { %v400_v27 = vsel %vm358_vm6, %v388_v15, %v399_v17  ;;  %v423_v28 = vrot.slane %v409_v22, 4  ;;  %v429_v29 = vrot.slane %v410_v23, 4 }
  0x40   : > { %364 = vst [vmem:[%s778_s8] sm:$0xf] %v363_v24  ;;  %v401_v30 = vsel %vm360_vm7, %v394_v21, %v400_v27  ;;  %v412_v31 = vadd.f32 %v411_v25, %v407_v10  ;;  %v418_v32 = vadd.f32 %v417_v26, %v408_v11 }
  0x41   : > { %v403_v18 = vadd.f32 %v567_v16, %v401_v30  ;;  %v424_v33 = vadd.f32 %v423_v28, %v409_v22  ;;  %v430_v34 = vadd.f32 %v429_v29, %v410_v23 }
  0x42   : > { %v413_v19 = vrot.slane %v412_v31, 2  ;;  %v419_v35 = vrot.slane %v418_v32, 2 }
  0x43   : > { %568 = vst [vmem:[%s778_s8 + $0x4] sm:$0xf] %v403_v18  ;;  %v425_v36 = vrot.slane %v424_v33, 2  ;;  %v431_v37 = vrot.slane %v430_v34, 2 }
  0x44   : > { %v414_v38 = vadd.f32 %v413_v19, %v412_v31  ;;  %v420_v39 = vadd.f32 %v419_v35, %v418_v32 }
  0x45   : > { %v426_v40 = vadd.f32 %v425_v36, %v424_v33  ;;  %v432_v41 = vadd.f32 %v431_v37, %v430_v34 }
  0x46   : > { %v415_v42 = vrot.slane %v414_v38, 1  ;;  %v421_v43 = vrot.slane %v420_v39, 1 }
  0x47   : > { %v427_v44 = vrot.slane %v426_v40, 1  ;;  %v433_v45 = vrot.slane %v432_v41, 1 }
  0x48   : > { %v416_v46 = vadd.f32 %v415_v42, %v414_v38  ;;  %v422_v47 = vadd.f32 %v421_v43, %v420_v39 }
  0x49   : > { %v428_v48 = vadd.f32 %v427_v44, %v426_v40  ;;  %v434_v49 = vadd.f32 %v433_v45, %v432_v41 }
  0x4a   : > { %v439_v51 = vsel %vm356_vm5, %v422_v47, %v416_v46 }
  0x4b   : > { %v440_v52 = vsel %vm358_vm6, %v428_v48, %v439_v51 }
  0x4c   : > { %v441_v53 = vsel %vm360_vm7, %v434_v49, %v440_v52 }
  0x4d   : > { %v443_v54 = vadd.f32 %v569_v50, %v441_v53 }
  0x4f   : > { %570 = vst [vmem:[%s778_s8 + $0x8] sm:$0xf] %v443_v54 }
  0x50 PF: > { %s12_s13 = sadd.s32 1, %s702_s13   ;;  %s838_s9 = smov %s690_s10 }
  0x51   : > { %p9_p11 = scmp.ge.s32.totalorder %s12_s13, 4   ;;  %s839_s10 = smov %s759_s17 }
  0x52   : > { %s840_s11 = smov %s698_s12  ;;  %s841_s12 = smov %s843_s14 }
  0x53   :  { %11 = sbr.rel (!%p9_p11) target bundleno = 3 (0x3), region = 126 }

</bundles_post_ra>
